<compile_context>
chip_gen: v5e
topology: v5e:2x2
jax: 0.10.0
libtpu: 0.0.40
codegen_flags: <defaults>
</compile_context>

<pallas_src>
import functools

import jax
import jax.numpy as jnp
from jax.experimental import pallas as pl
from jax.experimental.pallas import tpu as pltpu

_LANE = 128
_SUBLANE = 8


def _round_up(n, m):
    return ((n + m - 1) // m) * m


def _hash_u32(x):
    # splitmix32-style finalizer: cheap, pure 32-bit VPU integer ops.
    x = x ^ (x >> jnp.uint32(16))
    x = x * jnp.uint32(0x7FEB352D)
    x = x ^ (x >> jnp.uint32(15))
    x = x * jnp.uint32(0x846CA68B)
    x = x ^ (x >> jnp.uint32(16))
    return x


def simple_nn_kernel(seed_ref, x_ref, w1_ref, b1_ref, w2_ref, b2_ref, out_ref,
                     *, dropout_rate, training):
    # fc1: (TB, Dp) @ (Dp, Hp) on the MXU (bf16 operands, f32 accumulation).
    h = jnp.dot(x_ref[...], w1_ref[...], preferred_element_type=jnp.float32)
    h = h + b1_ref[...]
    # ReLU (f32 — correct on v5e which has no bf16 VPU; cheap everywhere).
    h = jnp.maximum(h, 0.0)

    if training and dropout_rate:
        # Inverted dropout with a counter-based hash. One 32-bit hash yields
        # FOUR keep-decisions (one byte per contiguous hidden-dim quarter),
        # so the integer-hash VALU cost is ~1/4 of one-hash-per-element.
        keep_prob = 1.0 - dropout_rate
        inv_keep = 1.0 / keep_prob
        # 8-bit threshold: keep iff byte < round(keep_prob * 256).
        thresh8 = jnp.uint32(min(int(round(keep_prob * 256.0)), 255))

        tb, hp = h.shape
        assert hp % 4 == 0, "hidden dim must be padded to a multiple of 4"
        q = hp // 4  # hidden-dim quarter width covered by one hash byte

        rows = jax.lax.broadcasted_iota(jnp.int32, (tb, q), 0).astype(jnp.uint32)
        cols = jax.lax.broadcasted_iota(jnp.int32, (tb, q), 1).astype(jnp.uint32)
        seed = seed_ref[0].astype(jnp.uint32)
        tile = pl.program_id(0).astype(jnp.uint32)
        # Per-tile salt so different batch tiles draw independent masks.
        salt = (seed + tile * jnp.uint32(0x9E3779B9)) * jnp.uint32(0x85EBCA6B)
        if q & (q - 1) == 0:  # strength-reduce rows*q to a shift
            ctr = (rows << jnp.uint32(q.bit_length() - 1)) + cols + salt
        else:
            ctr = rows * jnp.uint32(q) + cols + salt
        bits = _hash_u32(ctr)                                  # (TB, Q) uint32

        # Byte j of the hash controls hidden columns [j*Q, (j+1)*Q).
        scales = [
            jnp.where(((bits >> jnp.uint32(8 * j)) & jnp.uint32(0xFF)) < thresh8,
                      jnp.float32(inv_keep), jnp.float32(0.0))
            for j in range(4)
        ]
        # 1/keep_prob is applied here (in-kernel, free VALU slot) instead of
        # pre-scaling W2 in the wrapper.
        h = h * jnp.concatenate(scales, axis=1)

    # fc2: (TB, Hp) @ (Hp, Cp) + bias.
    out = jnp.dot(h.astype(w2_ref.dtype), w2_ref[...],
                  preferred_element_type=jnp.float32)
    out = out + b2_ref[...]
    out_ref[...] = out.astype(out_ref.dtype)


def prepare_simple_nn_params(w1, b1, w2, b2, *, param_dtype=jnp.bfloat16,
                             lane_multiple=_LANE):
    """Pad + cast parameters ONCE (hoisted out of the per-call path).

    w1:(D,H) b1:(1,H) w2:(H,C) b2:(1,C). Weights are stored in bf16 (MXU
    operand dtype -> half the HBM->VMEM DMA bytes and VMEM residency);
    biases stay f32 (added after the f32 accumulation).
    lane_multiple: 128 is optimal for v5e's 128x128 MXU; use 256 on v6e/v7x
    if you want full 256-wide MXU occupancy at larger layer sizes.
    """
    D, H = w1.shape
    C = w2.shape[1]
    Dp = _round_up(D, lane_multiple)
    Hp = _round_up(H, lane_multiple)
    Cp = _round_up(C, lane_multiple)

    def pad2(a, r, c):
        pr, pc = r - a.shape[0], c - a.shape[1]
        return jnp.pad(a, ((0, pr), (0, pc))) if (pr or pc) else a

    return {
        "w1": pad2(w1, Dp, Hp).astype(param_dtype),
        "b1": pad2(b1.reshape(1, -1), 1, Hp).astype(jnp.float32),
        "w2": pad2(w2, Hp, Cp).astype(param_dtype),
        "b2": pad2(b2.reshape(1, -1), 1, Cp).astype(jnp.float32),
        "dims": (D, H, C),
    }


def simple_nn_forward(x, params, *, dropout_rate=0.5, training=True, seed=0,
                      batch_tile=256, out_dtype=None):
    """x:(B,D), params from prepare_simple_nn_params  ->  (B,C)."""
    D, H, C = params["dims"]
    w1p, b1p, w2p, b2p = params["w1"], params["b1"], params["w2"], params["b2"]
    Dp, Hp = w1p.shape
    Cp = w2p.shape[1]
    compute_dtype = w1p.dtype
    B = x.shape[0]
    # TODO(synk): emit bf16 output if downstream accepts it (halves writeback
    # bytes); kept at the input dtype to preserve the nn.Module contract.
    out_dtype = x.dtype if out_dtype is None else out_dtype

    # Batch tiling: lane-padded features, sublane-multiple batch tiles.
    TB = min(_round_up(B, _SUBLANE), batch_tile)
    Bp = _round_up(B, TB)
    # Prefer >= 2 grid steps so v7x's second TensorCore gets work under
    # dimension_semantics=("parallel",).
    if Bp // TB < 2 and TB > _SUBLANE:
        half = _round_up(max(TB // 2, _SUBLANE), _SUBLANE)
        if _round_up(B, half) // half >= 2:
            TB = half
            Bp = _round_up(B, TB)

    xp = x
    if x.shape != (Bp, Dp):
        xp = jnp.pad(x, ((0, Bp - B), (0, Dp - D)))
    if xp.dtype != compute_dtype:
        xp = xp.astype(compute_dtype)     # ship bf16 x (halves x DMA bytes)

    seed_arr = jnp.array([seed], dtype=jnp.int32)
    kernel = functools.partial(simple_nn_kernel, dropout_rate=dropout_rate,
                               training=training)

    # VMEM budget sized to actual residency (+ headroom), floor at the largest
    # per-chip default (32 MiB), capped at v7x physical (64 MiB).
    nbytes = lambda a: a.size * a.dtype.itemsize
    resident = (nbytes(w1p) + nbytes(w2p) + nbytes(b1p) + nbytes(b2p)
                + 2 * TB * Dp * jnp.dtype(compute_dtype).itemsize   # x (2 bufs)
                + 2 * TB * Cp * jnp.dtype(out_dtype).itemsize       # out (2 bufs)
                + TB * Hp * 4)                                      # f32 h
    vmem_limit = int(min(max(2 * resident + (2 << 20), 32 << 20), 64 << 20))

    def build_call(resident_mode):
        def resident_spec(shape):
            # Grid-invariant operand: constant index_map; single-buffered when
            # supported (double buffering a never-changing block is pure waste).
            if resident_mode is None:
                return pl.BlockSpec(shape, lambda i, _s: (0, 0))
            return pl.BlockSpec(shape, lambda i, _s: (0, 0),
                                pipeline_mode=resident_mode)

        return pl.pallas_call(
            kernel,
            out_shape=jax.ShapeDtypeStruct((Bp, Cp), out_dtype),
            grid_spec=pltpu.PrefetchScalarGridSpec(
                num_scalar_prefetch=1,            # seed lands in SMEM
                grid=(Bp // TB,),                 # batch tiles
                in_specs=[
                    pl.BlockSpec((TB, Dp), lambda i, _s: (i, 0)),   # x tile
                    resident_spec((Dp, Hp)),                        # W1
                    resident_spec((1, Hp)),                         # b1
                    resident_spec((Hp, Cp)),                        # W2
                    resident_spec((1, Cp)),                         # b2
                ],
                out_specs=pl.BlockSpec((TB, Cp), lambda i, _s: (i, 0)),
            ),
            compiler_params=pltpu.CompilerParams(
                dimension_semantics=("parallel",),   # megacore / v7x 2-TC split
                vmem_limit_bytes=vmem_limit),
        )

    args = (seed_arr, xp, w1p, b1p, w2p, b2p)
    try:
        out_p = build_call(pl.Buffered(1))(*args)
    except Exception:
        # Fallback for jax versions rejecting buffer_count=1 / pipeline_mode.
        out_p = build_call(None)(*args)
    return out_p[:B, :C]


def _reference_eval(x, w1, b1, w2, b2, compute_dtype):
    # Pure-JAX reference with the same bf16-operand / f32-accumulate recipe.
    h = jnp.dot(x.astype(compute_dtype), w1.astype(compute_dtype),
                preferred_element_type=jnp.float32) + b1
    h = jnp.maximum(h, 0.0)
    return jnp.dot(h.astype(compute_dtype), w2.astype(compute_dtype),
                   preferred_element_type=jnp.float32) + b2


if __name__ == "__main__":
    # SimpleNN(input_size=32, hidden_size=32, num_classes=16), batch=8
    batch, input_size, hidden_size, num_classes = 8, 32, 32, 16
    dropout_rate = 0.5

    key = jax.random.PRNGKey(0)
    kx, kw1, kb1, kw2, kb2 = jax.random.split(key, 5)

    x = jax.random.normal(kx, (batch, input_size), dtype=jnp.float32)

    # Deterministic init mirroring nn.Linear's U(-1/sqrt(fan_in), 1/sqrt(fan_in)).
    lim1 = 1.0 / (input_size ** 0.5)
    w1 = jax.random.uniform(kw1, (input_size, hidden_size), jnp.float32, -lim1, lim1)
    b1 = jax.random.uniform(kb1, (1, hidden_size), jnp.float32, -lim1, lim1)
    lim2 = 1.0 / (hidden_size ** 0.5)
    w2 = jax.random.uniform(kw2, (hidden_size, num_classes), jnp.float32, -lim2, lim2)
    b2 = jax.random.uniform(kb2, (1, num_classes), jnp.float32, -lim2, lim2)

    # Pad + cast the parameters once; reuse across all forward calls.
    params = prepare_simple_nn_params(w1, b1, w2, b2)

    # Training-mode forward (dropout active, deterministic hash-based mask).
    out_train = simple_nn_forward(x, params, dropout_rate=dropout_rate,
                                  training=True, seed=1234)
    jax.block_until_ready(out_train)
    assert out_train.shape == (batch, num_classes)
    assert bool(jnp.all(jnp.isfinite(out_train)))

    # Same seed -> same dropout mask -> identical output.
    out_train2 = simple_nn_forward(x, params, dropout_rate=dropout_rate,
                                   training=True, seed=1234)
    jax.block_until_ready(out_train2)
    assert bool(jnp.array_equal(out_train, out_train2)), "dropout not deterministic"

    # Eval-mode forward (dropout is identity) — verify against a pure-JAX
    # reference computed with the same bf16-operand / f32-accumulate recipe.
    out_eval = simple_nn_forward(x, params, dropout_rate=dropout_rate,
                                 training=False, seed=0)
    jax.block_until_ready(out_eval)
    ref = _reference_eval(x, w1, b1, w2, b2, jnp.bfloat16)
    assert jnp.allclose(out_eval, ref, atol=1e-2, rtol=1e-2), "eval-mode mismatch"

    print("KERNEL_OK")
</pallas_src>

<mosaic_0001>
module attributes {stable_mosaic.version = 11 : i64} {
  func.func @simple_nn_kernel(%arg0: i32, %arg1: memref<1xi32, #tpu.memory_space<smem>>, %arg2: memref<8x128xbf16, #tpu.memory_space<vmem>>, %arg3: memref<128x128xbf16, #tpu.memory_space<vmem>>, %arg4: memref<1x128xf32, #tpu.memory_space<vmem>>, %arg5: memref<128x128xbf16, #tpu.memory_space<vmem>>, %arg6: memref<1x128xf32, #tpu.memory_space<vmem>>, %arg7: memref<8x128xf32, #tpu.memory_space<vmem>>) attributes {dimension_semantics = [#tpu.dimension_semantics<parallel>], iteration_bounds = array<i64: 1>, scalar_prefetch = 1 : i64, scratch_operands = 0 : i64, tpu.core_type = #tpu.core_type<tc>, window_params = [{transform_indices = @transform_0, window_bounds = array<i64: 8, 128>}, {pipeline_mode = #tpu.pipeline_mode<synchronous>, transform_indices = @transform_1, window_bounds = array<i64: 128, 128>}, {pipeline_mode = #tpu.pipeline_mode<synchronous>, transform_indices = @transform_2, window_bounds = array<i64: 1, 128>}, {pipeline_mode = #tpu.pipeline_mode<synchronous>, transform_indices = @transform_3, window_bounds = array<i64: 128, 128>}, {pipeline_mode = #tpu.pipeline_mode<synchronous>, transform_indices = @transform_4, window_bounds = array<i64: 1, 128>}, {transform_indices = @transform_5, window_bounds = array<i64: 8, 128>}]} {
    %c0 = arith.constant 0 : index
    %c0_0 = arith.constant 0 : index
    %0 = vector.load %arg2[%c0, %c0_0] : memref<8x128xbf16, #tpu.memory_space<vmem>>, vector<8x128xbf16>
    %c0_1 = arith.constant 0 : index
    %c0_2 = arith.constant 0 : index
    %1 = vector.load %arg3[%c0_1, %c0_2] : memref<128x128xbf16, #tpu.memory_space<vmem>>, vector<128x128xbf16>
    %cst = arith.constant dense<0.000000e+00> : vector<8x128xf32>
    %2 = tpu.matmul %0, %1, %cst {dimension_numbers = #tpu.dot_dimension_numbers<[1], [0], [0], [1], [0, 0, 1, 1], [], []>} : vector<8x128xbf16>, vector<128x128xbf16>, vector<8x128xf32> -> vector<8x128xf32>
    %c0_3 = arith.constant 0 : index
    %c0_4 = arith.constant 0 : index
    %3 = vector.load %arg4[%c0_3, %c0_4] : memref<1x128xf32, #tpu.memory_space<vmem>>, vector<1x128xf32>
    %4 = vector.broadcast %3 : vector<1x128xf32> to vector<8x128xf32>
    %5 = arith.addf %2, %4 : vector<8x128xf32>
    %cst_5 = arith.constant 0.000000e+00 : f32
    %6 = vector.broadcast %cst_5 : f32 to vector<8x128xf32>
    %7 = arith.maximumf %5, %6 : vector<8x128xf32>
    %8 = tpu.iota {dimensions = array<i32: 0>} : vector<8x32xi32>
    %9 = tpu.iota {dimensions = array<i32: 1>} : vector<8x32xi32>
    %c0_6 = arith.constant 0 : index
    %10 = memref.load %arg1[%c0_6] : memref<1xi32, #tpu.memory_space<smem>>
    %c-1640531527_i32 = arith.constant -1640531527 : i32
    %11 = arith.muli %arg0, %c-1640531527_i32 : i32
    %12 = arith.addi %10, %11 : i32
    %c-2048144789_i32 = arith.constant -2048144789 : i32
    %13 = arith.muli %12, %c-2048144789_i32 : i32
    %c5_i32 = arith.constant 5 : i32
    %14 = vector.broadcast %c5_i32 : i32 to vector<8x32xi32>
    %15 = arith.shli %8, %14 : vector<8x32xi32>
    %16 = arith.addi %15, %9 : vector<8x32xi32>
    %17 = vector.broadcast %13 : i32 to vector<8x32xi32>
    %18 = arith.addi %16, %17 : vector<8x32xi32>
    %c16_i32 = arith.constant 16 : i32
    %19 = vector.broadcast %c16_i32 : i32 to vector<8x32xi32>
    %20 = arith.shrui %18, %19 : vector<8x32xi32>
    %21 = arith.xori %18, %20 : vector<8x32xi32>
    %c2146121005_i32 = arith.constant 2146121005 : i32
    %22 = vector.broadcast %c2146121005_i32 : i32 to vector<8x32xi32>
    %23 = arith.muli %21, %22 : vector<8x32xi32>
    %c15_i32 = arith.constant 15 : i32
    %24 = vector.broadcast %c15_i32 : i32 to vector<8x32xi32>
    %25 = arith.shrui %23, %24 : vector<8x32xi32>
    %26 = arith.xori %23, %25 : vector<8x32xi32>
    %c-2073254261_i32 = arith.constant -2073254261 : i32
    %27 = vector.broadcast %c-2073254261_i32 : i32 to vector<8x32xi32>
    %28 = arith.muli %26, %27 : vector<8x32xi32>
    %c16_i32_7 = arith.constant 16 : i32
    %29 = vector.broadcast %c16_i32_7 : i32 to vector<8x32xi32>
    %30 = arith.shrui %28, %29 : vector<8x32xi32>
    %31 = arith.xori %28, %30 : vector<8x32xi32>
    %c0_i32 = arith.constant 0 : i32
    %32 = vector.broadcast %c0_i32 : i32 to vector<8x32xi32>
    %33 = arith.shrui %31, %32 : vector<8x32xi32>
    %c255_i32 = arith.constant 255 : i32
    %34 = vector.broadcast %c255_i32 : i32 to vector<8x32xi32>
    %35 = arith.andi %33, %34 : vector<8x32xi32>
    %c128_i32 = arith.constant 128 : i32
    %36 = vector.broadcast %c128_i32 : i32 to vector<8x32xi32>
    %37 = arith.cmpi ult, %35, %36 : vector<8x32xi32>
    %cst_8 = arith.constant 2.000000e+00 : f32
    %cst_9 = arith.constant 0.000000e+00 : f32
    %38 = vector.broadcast %cst_8 : f32 to vector<8x32xf32>
    %39 = vector.broadcast %cst_9 : f32 to vector<8x32xf32>
    %40 = arith.select %37, %38, %39 : vector<8x32xi1>, vector<8x32xf32>
    %c8_i32 = arith.constant 8 : i32
    %41 = vector.broadcast %c8_i32 : i32 to vector<8x32xi32>
    %42 = arith.shrui %31, %41 : vector<8x32xi32>
    %c255_i32_10 = arith.constant 255 : i32
    %43 = vector.broadcast %c255_i32_10 : i32 to vector<8x32xi32>
    %44 = arith.andi %42, %43 : vector<8x32xi32>
    %c128_i32_11 = arith.constant 128 : i32
    %45 = vector.broadcast %c128_i32_11 : i32 to vector<8x32xi32>
    %46 = arith.cmpi ult, %44, %45 : vector<8x32xi32>
    %cst_12 = arith.constant 2.000000e+00 : f32
    %cst_13 = arith.constant 0.000000e+00 : f32
    %47 = vector.broadcast %cst_12 : f32 to vector<8x32xf32>
    %48 = vector.broadcast %cst_13 : f32 to vector<8x32xf32>
    %49 = arith.select %46, %47, %48 : vector<8x32xi1>, vector<8x32xf32>
    %c16_i32_14 = arith.constant 16 : i32
    %50 = vector.broadcast %c16_i32_14 : i32 to vector<8x32xi32>
    %51 = arith.shrui %31, %50 : vector<8x32xi32>
    %c255_i32_15 = arith.constant 255 : i32
    %52 = vector.broadcast %c255_i32_15 : i32 to vector<8x32xi32>
    %53 = arith.andi %51, %52 : vector<8x32xi32>
    %c128_i32_16 = arith.constant 128 : i32
    %54 = vector.broadcast %c128_i32_16 : i32 to vector<8x32xi32>
    %55 = arith.cmpi ult, %53, %54 : vector<8x32xi32>
    %cst_17 = arith.constant 2.000000e+00 : f32
    %cst_18 = arith.constant 0.000000e+00 : f32
    %56 = vector.broadcast %cst_17 : f32 to vector<8x32xf32>
    %57 = vector.broadcast %cst_18 : f32 to vector<8x32xf32>
    %58 = arith.select %55, %56, %57 : vector<8x32xi1>, vector<8x32xf32>
    %c24_i32 = arith.constant 24 : i32
    %59 = vector.broadcast %c24_i32 : i32 to vector<8x32xi32>
    %60 = arith.shrui %31, %59 : vector<8x32xi32>
    %c255_i32_19 = arith.constant 255 : i32
    %61 = vector.broadcast %c255_i32_19 : i32 to vector<8x32xi32>
    %62 = arith.andi %60, %61 : vector<8x32xi32>
    %c128_i32_20 = arith.constant 128 : i32
    %63 = vector.broadcast %c128_i32_20 : i32 to vector<8x32xi32>
    %64 = arith.cmpi ult, %62, %63 : vector<8x32xi32>
    %cst_21 = arith.constant 2.000000e+00 : f32
    %cst_22 = arith.constant 0.000000e+00 : f32
    %65 = vector.broadcast %cst_21 : f32 to vector<8x32xf32>
    %66 = vector.broadcast %cst_22 : f32 to vector<8x32xf32>
    %67 = arith.select %64, %65, %66 : vector<8x32xi1>, vector<8x32xf32>
    %68 = tpu.concatenate %40, %49, %58, %67 in 1 : vector<8x32xf32>, vector<8x32xf32>, vector<8x32xf32>, vector<8x32xf32> -> vector<8x128xf32>
    %69 = arith.mulf %7, %68 : vector<8x128xf32>
    %70 = arith.truncf %69 : vector<8x128xf32> to vector<8x128xbf16>
    %c0_23 = arith.constant 0 : index
    %c0_24 = arith.constant 0 : index
    %71 = vector.load %arg5[%c0_23, %c0_24] : memref<128x128xbf16, #tpu.memory_space<vmem>>, vector<128x128xbf16>
    %cst_25 = arith.constant dense<0.000000e+00> : vector<8x128xf32>
    %72 = tpu.matmul %70, %71, %cst_25 {dimension_numbers = #tpu.dot_dimension_numbers<[1], [0], [0], [1], [0, 0, 1, 1], [], []>} : vector<8x128xbf16>, vector<128x128xbf16>, vector<8x128xf32> -> vector<8x128xf32>
    %c0_26 = arith.constant 0 : index
    %c0_27 = arith.constant 0 : index
    %73 = vector.load %arg6[%c0_26, %c0_27] : memref<1x128xf32, #tpu.memory_space<vmem>>, vector<1x128xf32>
    %74 = vector.broadcast %73 : vector<1x128xf32> to vector<8x128xf32>
    %75 = arith.addf %72, %74 : vector<8x128xf32>
    %c0_28 = arith.constant 0 : index
    %c0_29 = arith.constant 0 : index
    %76 = vector.load %arg7[%c0_28, %c0_29] : memref<8x128xf32, #tpu.memory_space<vmem>>, vector<8x128xf32>
    tpu.vector_store %arg7[%c0_28, %c0_29], %75 {strides = array<i32>} : memref<8x128xf32, #tpu.memory_space<vmem>>, vector<8x128xf32>,
    return
  }
  func.func @transform_0(%arg0: i32, %arg1: memref<1xi32, #tpu.memory_space<smem>>) -> (i32, i32) {
    %c0_i32 = arith.constant 0 : i32
    %c0_i32_0 = arith.constant 0 : i32
    return %arg0, %c0_i32 : i32, i32
  }
  func.func @transform_1(%arg0: i32, %arg1: memref<1xi32, #tpu.memory_space<smem>>) -> (i32, i32) {
    %c0_i32 = arith.constant 0 : i32
    %c0_i32_0 = arith.constant 0 : i32
    %c0_i32_1 = arith.constant 0 : i32
    return %c0_i32, %c0_i32_0 : i32, i32
  }
  func.func @transform_2(%arg0: i32, %arg1: memref<1xi32, #tpu.memory_space<smem>>) -> (i32, i32) {
    %c0_i32 = arith.constant 0 : i32
    %c0_i32_0 = arith.constant 0 : i32
    %c0_i32_1 = arith.constant 0 : i32
    return %c0_i32, %c0_i32_0 : i32, i32
  }
  func.func @transform_3(%arg0: i32, %arg1: memref<1xi32, #tpu.memory_space<smem>>) -> (i32, i32) {
    %c0_i32 = arith.constant 0 : i32
    %c0_i32_0 = arith.constant 0 : i32
    %c0_i32_1 = arith.constant 0 : i32
    return %c0_i32, %c0_i32_0 : i32, i32
  }
  func.func @transform_4(%arg0: i32, %arg1: memref<1xi32, #tpu.memory_space<smem>>) -> (i32, i32) {
    %c0_i32 = arith.constant 0 : i32
    %c0_i32_0 = arith.constant 0 : i32
    %c0_i32_1 = arith.constant 0 : i32
    return %c0_i32, %c0_i32_0 : i32, i32
  }
  func.func @transform_5(%arg0: i32, %arg1: memref<1xi32, #tpu.memory_space<smem>>) -> (i32, i32) {
    %c0_i32 = arith.constant 0 : i32
    %c0_i32_0 = arith.constant 0 : i32
    return %arg0, %c0_i32 : i32, i32
  }
}

module attributes {stable_mosaic.version = 11 : i64} {
  func.func @simple_nn_kernel(%arg0: i32, %arg1: memref<1xi32, #tpu.memory_space<smem>>, %arg2: memref<8x128xbf16, #tpu.memory_space<vmem>>, %arg3: memref<128x128xbf16, #tpu.memory_space<vmem>>, %arg4: memref<1x128xf32, #tpu.memory_space<vmem>>, %arg5: memref<128x128xbf16, #tpu.memory_space<vmem>>, %arg6: memref<1x128xf32, #tpu.memory_space<vmem>>, %arg7: memref<8x128xf32, #tpu.memory_space<vmem>>) attributes {dimension_semantics = [#tpu.dimension_semantics<parallel>], iteration_bounds = array<i64: 1>, scalar_prefetch = 1 : i64, scratch_operands = 0 : i64, tpu.core_type = #tpu.core_type<tc>, window_params = [{transform_indices = @transform_0, window_bounds = array<i64: 8, 128>}, {pipeline_mode = #tpu.pipeline_mode<synchronous>, transform_indices = @transform_1, window_bounds = array<i64: 128, 128>}, {pipeline_mode = #tpu.pipeline_mode<synchronous>, transform_indices = @transform_2, window_bounds = array<i64: 1, 128>}, {pipeline_mode = #tpu.pipeline_mode<synchronous>, transform_indices = @transform_3, window_bounds = array<i64: 128, 128>}, {pipeline_mode = #tpu.pipeline_mode<synchronous>, transform_indices = @transform_4, window_bounds = array<i64: 1, 128>}, {transform_indices = @transform_5, window_bounds = array<i64: 8, 128>}]} {
    %c0 = arith.constant 0 : index
    %c0_0 = arith.constant 0 : index
    %0 = vector.load %arg2[%c0, %c0_0] : memref<8x128xbf16, #tpu.memory_space<vmem>>, vector<8x128xbf16>
    %c0_1 = arith.constant 0 : index
    %c0_2 = arith.constant 0 : index
    %1 = vector.load %arg3[%c0_1, %c0_2] : memref<128x128xbf16, #tpu.memory_space<vmem>>, vector<128x128xbf16>
    %cst = arith.constant dense<0.000000e+00> : vector<8x128xf32>
    %2 = tpu.matmul %0, %1, %cst {dimension_numbers = #tpu.dot_dimension_numbers<[1], [0], [0], [1], [0, 0, 1, 1], [], []>} : vector<8x128xbf16>, vector<128x128xbf16>, vector<8x128xf32> -> vector<8x128xf32>
    %c0_3 = arith.constant 0 : index
    %c0_4 = arith.constant 0 : index
    %3 = vector.load %arg4[%c0_3, %c0_4] : memref<1x128xf32, #tpu.memory_space<vmem>>, vector<1x128xf32>
    %4 = vector.broadcast %3 : vector<1x128xf32> to vector<8x128xf32>
    %5 = arith.addf %2, %4 : vector<8x128xf32>
    %cst_5 = arith.constant 0.000000e+00 : f32
    %6 = vector.broadcast %cst_5 : f32 to vector<8x128xf32>
    %7 = arith.maximumf %5, %6 : vector<8x128xf32>
    %8 = tpu.iota {dimensions = array<i32: 0>} : vector<8x32xi32>
    %9 = tpu.iota {dimensions = array<i32: 1>} : vector<8x32xi32>
    %c0_6 = arith.constant 0 : index
    %10 = memref.load %arg1[%c0_6] : memref<1xi32, #tpu.memory_space<smem>>
    %c-1640531527_i32 = arith.constant -1640531527 : i32
    %11 = arith.muli %arg0, %c-1640531527_i32 : i32
    %12 = arith.addi %10, %11 : i32
    %c-2048144789_i32 = arith.constant -2048144789 : i32
    %13 = arith.muli %12, %c-2048144789_i32 : i32
    %c5_i32 = arith.constant 5 : i32
    %14 = vector.broadcast %c5_i32 : i32 to vector<8x32xi32>
    %15 = arith.shli %8, %14 : vector<8x32xi32>
    %16 = arith.addi %15, %9 : vector<8x32xi32>
    %17 = vector.broadcast %13 : i32 to vector<8x32xi32>
    %18 = arith.addi %16, %17 : vector<8x32xi32>
    %c16_i32 = arith.constant 16 : i32
    %19 = vector.broadcast %c16_i32 : i32 to vector<8x32xi32>
    %20 = arith.shrui %18, %19 : vector<8x32xi32>
    %21 = arith.xori %18, %20 : vector<8x32xi32>
    %c2146121005_i32 = arith.constant 2146121005 : i32
    %22 = vector.broadcast %c2146121005_i32 : i32 to vector<8x32xi32>
    %23 = arith.muli %21, %22 : vector<8x32xi32>
    %c15_i32 = arith.constant 15 : i32
    %24 = vector.broadcast %c15_i32 : i32 to vector<8x32xi32>
    %25 = arith.shrui %23, %24 : vector<8x32xi32>
    %26 = arith.xori %23, %25 : vector<8x32xi32>
    %c-2073254261_i32 = arith.constant -2073254261 : i32
    %27 = vector.broadcast %c-2073254261_i32 : i32 to vector<8x32xi32>
    %28 = arith.muli %26, %27 : vector<8x32xi32>
    %c16_i32_7 = arith.constant 16 : i32
    %29 = vector.broadcast %c16_i32_7 : i32 to vector<8x32xi32>
    %30 = arith.shrui %28, %29 : vector<8x32xi32>
    %31 = arith.xori %28, %30 : vector<8x32xi32>
    %c0_i32 = arith.constant 0 : i32
    %32 = vector.broadcast %c0_i32 : i32 to vector<8x32xi32>
    %33 = arith.shrui %31, %32 : vector<8x32xi32>
    %c255_i32 = arith.constant 255 : i32
    %34 = vector.broadcast %c255_i32 : i32 to vector<8x32xi32>
    %35 = arith.andi %33, %34 : vector<8x32xi32>
    %c128_i32 = arith.constant 128 : i32
    %36 = vector.broadcast %c128_i32 : i32 to vector<8x32xi32>
    %37 = arith.cmpi ult, %35, %36 : vector<8x32xi32>
    %cst_8 = arith.constant 2.000000e+00 : f32
    %cst_9 = arith.constant 0.000000e+00 : f32
    %38 = vector.broadcast %cst_8 : f32 to vector<8x32xf32>
    %39 = vector.broadcast %cst_9 : f32 to vector<8x32xf32>
    %40 = arith.select %37, %38, %39 : vector<8x32xi1>, vector<8x32xf32>
    %c8_i32 = arith.constant 8 : i32
    %41 = vector.broadcast %c8_i32 : i32 to vector<8x32xi32>
    %42 = arith.shrui %31, %41 : vector<8x32xi32>
    %c255_i32_10 = arith.constant 255 : i32
    %43 = vector.broadcast %c255_i32_10 : i32 to vector<8x32xi32>
    %44 = arith.andi %42, %43 : vector<8x32xi32>
    %c128_i32_11 = arith.constant 128 : i32
    %45 = vector.broadcast %c128_i32_11 : i32 to vector<8x32xi32>
    %46 = arith.cmpi ult, %44, %45 : vector<8x32xi32>
    %cst_12 = arith.constant 2.000000e+00 : f32
    %cst_13 = arith.constant 0.000000e+00 : f32
    %47 = vector.broadcast %cst_12 : f32 to vector<8x32xf32>
    %48 = vector.broadcast %cst_13 : f32 to vector<8x32xf32>
    %49 = arith.select %46, %47, %48 : vector<8x32xi1>, vector<8x32xf32>
    %c16_i32_14 = arith.constant 16 : i32
    %50 = vector.broadcast %c16_i32_14 : i32 to vector<8x32xi32>
    %51 = arith.shrui %31, %50 : vector<8x32xi32>
    %c255_i32_15 = arith.constant 255 : i32
    %52 = vector.broadcast %c255_i32_15 : i32 to vector<8x32xi32>
    %53 = arith.andi %51, %52 : vector<8x32xi32>
    %c128_i32_16 = arith.constant 128 : i32
    %54 = vector.broadcast %c128_i32_16 : i32 to vector<8x32xi32>
    %55 = arith.cmpi ult, %53, %54 : vector<8x32xi32>
    %cst_17 = arith.constant 2.000000e+00 : f32
    %cst_18 = arith.constant 0.000000e+00 : f32
    %56 = vector.broadcast %cst_17 : f32 to vector<8x32xf32>
    %57 = vector.broadcast %cst_18 : f32 to vector<8x32xf32>
    %58 = arith.select %55, %56, %57 : vector<8x32xi1>, vector<8x32xf32>
    %c24_i32 = arith.constant 24 : i32
    %59 = vector.broadcast %c24_i32 : i32 to vector<8x32xi32>
    %60 = arith.shrui %31, %59 : vector<8x32xi32>
    %c255_i32_19 = arith.constant 255 : i32
    %61 = vector.broadcast %c255_i32_19 : i32 to vector<8x32xi32>
    %62 = arith.andi %60, %61 : vector<8x32xi32>
    %c128_i32_20 = arith.constant 128 : i32
    %63 = vector.broadcast %c128_i32_20 : i32 to vector<8x32xi32>
    %64 = arith.cmpi ult, %62, %63 : vector<8x32xi32>
    %cst_21 = arith.constant 2.000000e+00 : f32
    %cst_22 = arith.constant 0.000000e+00 : f32
    %65 = vector.broadcast %cst_21 : f32 to vector<8x32xf32>
    %66 = vector.broadcast %cst_22 : f32 to vector<8x32xf32>
    %67 = arith.select %64, %65, %66 : vector<8x32xi1>, vector<8x32xf32>
    %68 = tpu.concatenate %40, %49, %58, %67 in 1 : vector<8x32xf32>, vector<8x32xf32>, vector<8x32xf32>, vector<8x32xf32> -> vector<8x128xf32>
    %69 = arith.mulf %7, %68 : vector<8x128xf32>
    %70 = arith.truncf %69 : vector<8x128xf32> to vector<8x128xbf16>
    %c0_23 = arith.constant 0 : index
    %c0_24 = arith.constant 0 : index
    %71 = vector.load %arg5[%c0_23, %c0_24] : memref<128x128xbf16, #tpu.memory_space<vmem>>, vector<128x128xbf16>
    %cst_25 = arith.constant dense<0.000000e+00> : vector<8x128xf32>
    %72 = tpu.matmul %70, %71, %cst_25 {dimension_numbers = #tpu.dot_dimension_numbers<[1], [0], [0], [1], [0, 0, 1, 1], [], []>} : vector<8x128xbf16>, vector<128x128xbf16>, vector<8x128xf32> -> vector<8x128xf32>
    %c0_26 = arith.constant 0 : index
    %c0_27 = arith.constant 0 : index
    %73 = vector.load %arg6[%c0_26, %c0_27] : memref<1x128xf32, #tpu.memory_space<vmem>>, vector<1x128xf32>
    %74 = vector.broadcast %73 : vector<1x128xf32> to vector<8x128xf32>
    %75 = arith.addf %72, %74 : vector<8x128xf32>
    %c0_28 = arith.constant 0 : index
    %c0_29 = arith.constant 0 : index
    %76 = vector.load %arg7[%c0_28, %c0_29] : memref<8x128xf32, #tpu.memory_space<vmem>>, vector<8x128xf32>
    tpu.vector_store %arg7[%c0_28, %c0_29], %75 {strides = array<i32>} : memref<8x128xf32, #tpu.memory_space<vmem>>, vector<8x128xf32>,
    return
  }
  func.func @transform_0(%arg0: i32, %arg1: memref<1xi32, #tpu.memory_space<smem>>) -> (i32, i32) {
    %c0_i32 = arith.constant 0 : i32
    %c0_i32_0 = arith.constant 0 : i32
    return %arg0, %c0_i32 : i32, i32
  }
  func.func @transform_1(%arg0: i32, %arg1: memref<1xi32, #tpu.memory_space<smem>>) -> (i32, i32) {
    %c0_i32 = arith.constant 0 : i32
    %c0_i32_0 = arith.constant 0 : i32
    %c0_i32_1 = arith.constant 0 : i32
    return %c0_i32, %c0_i32_0 : i32, i32
  }
  func.func @transform_2(%arg0: i32, %arg1: memref<1xi32, #tpu.memory_space<smem>>) -> (i32, i32) {
    %c0_i32 = arith.constant 0 : i32
    %c0_i32_0 = arith.constant 0 : i32
    %c0_i32_1 = arith.constant 0 : i32
    return %c0_i32, %c0_i32_0 : i32, i32
  }
  func.func @transform_3(%arg0: i32, %arg1: memref<1xi32, #tpu.memory_space<smem>>) -> (i32, i32) {
    %c0_i32 = arith.constant 0 : i32
    %c0_i32_0 = arith.constant 0 : i32
    %c0_i32_1 = arith.constant 0 : i32
    return %c0_i32, %c0_i32_0 : i32, i32
  }
  func.func @transform_4(%arg0: i32, %arg1: memref<1xi32, #tpu.memory_space<smem>>) -> (i32, i32) {
    %c0_i32 = arith.constant 0 : i32
    %c0_i32_0 = arith.constant 0 : i32
    %c0_i32_1 = arith.constant 0 : i32
    return %c0_i32, %c0_i32_0 : i32, i32
  }
  func.func @transform_5(%arg0: i32, %arg1: memref<1xi32, #tpu.memory_space<smem>>) -> (i32, i32) {
    %c0_i32 = arith.constant 0 : i32
    %c0_i32_0 = arith.constant 0 : i32
    return %arg0, %c0_i32 : i32, i32
  }
}

</mosaic_0001>

<bundles_post_ra>
// kernel: tpu_custom_call.1
= control target key start
LH: loop header
LB: loop body
LE: loop exit
PB: predicated region body
PF: predicated region fallthrough
CT: control target
= control target key end

     0   :  { %12 = vsyncpa [#allocation5], 0  ;;  %s582_s0 = inlined_call_operand.<no memory space> [shape: s32[1], index: 0, kind: input, shape index: {}]   ;;  %s583_s1 = inlined_call_operand.hbm [shape: bf16[8,128], index: 1, kind: input, shape index: {}]   ;;  %s584_s2 = inlined_call_operand.hbm [shape: bf16[128,128], index: 2, kind: input, shape index: {}]   ;;  %s585_s3 = inlined_call_operand.vmem [shape: f32[1,128], index: 3, kind: input, shape index: {}]   ;;  %s586_s4 = inlined_call_operand.hbm [shape: bf16[128,128], index: 4, kind: input, shape index: {}]   ;;  %s587_s5 = inlined_call_operand.vmem [shape: f32[1,128], index: 5, kind: input, shape index: {}]   ;;  %s588_s6 = inlined_call_operand.hbm [shape: f32[8,128], index: 6, kind: output, shape index: {}]  }
   0x1   :  { %13 = vsyncpa [#allocation8], 0  ;;  %s30_s23 = sshll.u32 %s584_s2, 4  ;;  %s31_s23 = int_to_ptr.hbm [resolvable:$true] %s30_s23 }
   0x2   :  { %14 = vsyncpa [#allocation6], 0  ;;  %s512_s24 = smov [#allocation7]   ;;  %s20_s28 = sshll.u32 %s583_s1, 4  ;;  %s21_s28 = int_to_ptr.hbm [resolvable:$true] %s20_s28 }
   0x3   :  { %s32_s25 = sshll.u32 %s512_s24, 4  ;;  %s513_s29 = smov 64   ;;  %s33_s25 = int_to_ptr.vmem [resolvable:$true] %s32_s25 }
   0x4   :  { %s514_s30 = smov 4   ;;  %s515_s7 = smov [#allocation4]  }
   0x5   :  { %38 = dma.hbm_to_vmem [thread:$0]  %s31_s23, 1024, %s33_s25, [#allocation8], %s513_s29, %s513_s29, %s514_s30  }
   0x6   :  { %s22_s8 = sshll.u32 %s515_s7, 4  ;;  %s45_s2 = sshll.u32 %s586_s4, 4  ;;  %s23_s8 = int_to_ptr.vmem [resolvable:$true] %s22_s8  ;;  %s46_s2 = int_to_ptr.hbm [resolvable:$true] %s45_s2 }
   0x7   :  { %25 = dma.hbm_to_vmem [thread:$0]  %s21_s28, 64, %s23_s8, [#allocation5]  }
   0x8   :  { %s516_s11 = smov [#allocation9]  }
   0x9   :  { %s47_s12 = sshll.u32 %s516_s11, 4  ;;  %s48_s12 = int_to_ptr.vmem [resolvable:$true] %s47_s12 }
   0xa   :  { %53 = dma.hbm_to_vmem [thread:$0]  %s46_s2, 1024, %s48_s12, [#allocation8], %s513_s29, %s513_s29, %s514_s30  }
   0xb   :  { %506 = dma.done.wait [#allocation5], 64  }
   0xc   :  { %507 = vsyncadd [#allocation5], 4294967232 }
   0xd   :  { %508 = dma.done.wait [#allocation8], 2048  }
   0xe   :  { %509 = vsyncadd [#allocation8], 4294965248  ;;  %v151_v0 = vlaneseq  ;;  %s158_s14 = smul.u32 2246822507, %s582_s0  ;;  %v390_v6 = vld [vmem:[#allocation7 + $0x38] sm:$0xff]  ;;  %v389_v8 = vld [vmem:[#allocation7 + $0x30] sm:$0xff] }
   0xf   :  { %137 = vmatpush.bf16.msra.mxu0 %v390_v6  ;;  %v398_v10 = vld [vmem:[#allocation9 + $0x38] sm:$0xff]  ;;  %v397_v12 = vld [vmem:[#allocation9 + $0x30] sm:$0xff]  ;;  %v388_v13 = vld [vmem:[#allocation7 + $0x28] sm:$0xff]  ;;  %v517_v32 = vmov 0.0   ;;  %s518_s0 = smov 96   ;;  %s519_s4 = smov 32  }
  0x10   :  { %v152_v1 = vshrl.u32 %v151_v0, 7  ;;  %v154_v2 = vand.u32 127, %v151_v0  ;;  %v161_v4 = vstv %s158_s14  ;;  %282 = vmatpush.bf16.msra.mxu1 %v398_v10  ;;  %v396_v16 = vld [vmem:[#allocation9 + $0x28] sm:$0xff]  ;;  %v387_v17 = vld [vmem:[#allocation7 + $0x20] sm:$0xff]  ;;  %v386_v20 = vld [vmem:[#allocation7 + $0x18] sm:$0xff]  ;;  %vm206_vm4 = vcmask 261120  }
  0x11   :  { %v385_v23 = vld [vmem:[#allocation7 + $0x10] sm:$0xff]  ;;  %v384_v30 = vld [vmem:[#allocation7 + $0x8] sm:$0xff]  ;;  %v383_v35 = vld [vmem:[#allocation7] sm:$0xff]  ;;  %vm208_vm5 = vcmask 523264   ;;  %vm210_vm6 = vcmask 785408   ;;  %s520_s19 = smov [#allocation10]  }
  0x12   :  { %v159_v3 = vshll.u32 %v152_v1, 5  ;;  %v68_v37 = vld [vmem:[#allocation4] sm:$0xf]  ;;  %v395_v39 = vld [vmem:[#allocation9 + $0x20] sm:$0xff]  ;;  %v393_v41 = vld [vmem:[#allocation9 + $0x10] sm:$0xff]  ;;  %s303_s22 = sshll.u32 %s588_s6, 4  ;;  %s304_s22 = int_to_ptr.hbm [resolvable:$true] %s303_s22 }
  0x13   :  { %138 = vmatpush.bf16.msra.mxu0 %v389_v8  ;;  %v394_v40 = vld [vmem:[#allocation9 + $0x18] sm:$0xff]  ;;  %v392_v42 = vld [vmem:[#allocation9 + $0x8] sm:$0xff]  ;;  %v391_v43 = vld [vmem:[#allocation9] sm:$0xff] }
  0x14   :  { %v160_v5 = vadd.s32 %v159_v3, %v154_v2  ;;  %283 = vmatpush.bf16.msra.mxu1 %v397_v12  ;;  %v408_v48 = vld [vmem:[%s585_s3] ss:$0 sm:$0xff]  ;;  %s301_s3 = sshll.u32 %s520_s19, 4  ;;  %s302_s3 = int_to_ptr.vmem [resolvable:$true] %s301_s3 }
  0x15   :  { %v409_v60 = vld [vmem:[%s587_s5] ss:$0 sm:$0xff] }
  0x16   :  { %v162_v7 = vadd.s32 %v161_v4, %v160_v5 }
  0x17   :  { %139 = vmatpush.bf16.msra.mxu0 %v388_v13 }
  0x18   :  { %v163_v9 = vshrl.u32 %v162_v7, 16  ;;  %284 = vmatpush.bf16.msra.mxu1 %v396_v16 }
  0x1a   :  { %v164_v11 = vxor.u32 %v163_v9, %v162_v7 }
  0x1b   :  { %140 = vmatpush.bf16.msra.mxu0 %v387_v17 }
  0x1c   :  { %v165_v14 = vmul.u32 2146121005, %v164_v11  ;;  %285 = vmatpush.bf16.msra.mxu1 %v395_v39 }
  0x1e   :  { %v166_v15 = vshrl.u32 %v165_v14, 15 }
  0x1f   :  { %141 = vmatpush.bf16.msra.mxu0 %v386_v20 }
  0x20   :  { %v167_v18 = vxor.u32 %v166_v15, %v165_v14  ;;  %286 = vmatpush.bf16.msra.mxu1 %v394_v40 }
  0x22   :  { %v168_v19 = vmul.u32 2221713035, %v167_v18 }
  0x23   :  { %142 = vmatpush.bf16.msra.mxu0 %v385_v23 }
  0x24   :  { %v169_v21 = vshrl.u32 %v168_v19, 16  ;;  %287 = vmatpush.bf16.msra.mxu1 %v393_v41 }
  0x26   :  { %v170_v22 = vxor.u32 %v169_v21, %v168_v19 }
  0x27   :  { %143 = vmatpush.bf16.msra.mxu0 %v384_v30 }
  0x28   :  { %v176_v24 = vshrl.u32 %v170_v22, 8  ;;  %v182_v25 = vshrl.u32 %v170_v22, 16  ;;  %v349_v26 = vshrl.u32 %v170_v22, 24  ;;  %288 = vmatpush.bf16.msra.mxu1 %v392_v42  ;;  %v171_v44 = vand.u32 255, %v170_v22 }
  0x2a   :  { %v177_v27 = vand.u32 255, %v176_v24  ;;  %v183_v28 = vand.u32 255, %v182_v25  ;;  %v350_v29 = vxor.u32 2147483648, %v349_v26  ;;  %v346_v46 = vxor.u32 2147483648, %v171_v44 }
  0x2b   :  { %144 = vmatpush.bf16.msra.mxu0 %v383_v35 }
  0x2c   :  { %v347_v31 = vxor.u32 2147483648, %v177_v27  ;;  %vm192_vm0 = vcmp.lt.s32.totalorder %v350_v29, 2147483776  ;;  %v348_v34 = vxor.u32 2147483648, %v183_v28  ;;  %289 = vmatpush.bf16.msra.mxu1 %v391_v43  ;;  %vm174_vm3 = vcmp.lt.s32.totalorder %v346_v46, 2147483776 }
  0x2d   :  { %v193_v33 = vsel %vm192_vm0, 2.0, %v517_v32  ;;  %v175_v47 = vsel %vm174_vm3, 2.0, %v517_v32 }
  0x2e   :  { %vm180_vm1 = vcmp.lt.s32.totalorder %v347_v31, 2147483776  ;;  %203 = vrot.lane.b32.xlu1 %v193_v33, %s518_s0  ;;  %vm186_vm2 = vcmp.lt.s32.totalorder %v348_v34, 2147483776  ;;  %145 = vmatmul.bf16.vlgmr.msra.gmra.mxu0 %v68_v37 }
  0x2f   :  { %v181_v36 = vsel %vm180_vm1, 2.0, %v517_v32  ;;  %v187_v38 = vsel %vm186_vm2, 2.0, %v517_v32 }
  0x30   :  { %195 = vrot.lane.b32.xlu0 %v181_v36, %s519_s4 }
  0x38   :  { %199 = vrot.lane.b32.xlu0 %v187_v38, %s513_s29 }
  0xa0   :  { %v204_v53 = vpop.permute.xlu1 %203 }
  0xa2   :  { %v196_v45 = vpop.permute.xlu0 %195 }
  0xa3   :  { %v207_v49 = vsel %vm206_vm4, %v175_v47, %v196_v45 }
  0xaa   :  { %v200_v50 = vpop.permute.xlu0 %199 }
  0xab   :  { %v146_v51 = vpop.f32.mrf.mxu0  ;;  %v209_v52 = vsel %vm208_vm5, %v207_v49, %v200_v50 }
  0xac   :  { %v147_v54 = vadd.f32 %v408_v48, %v146_v51  ;;  %v211_v56 = vsel %vm210_vm6, %v209_v52, %v204_v53 }
  0xae   :  { %v150_v55 = vmax.f32 %v147_v54, 0.0 }
  0xb0   :  { %v212_v57 = vmul.f32 %v211_v56, %v150_v55 }
  0xb2   :  { %v213_v58 = vpack.c.bf16 %v212_v57, %v212_v57 }
  0xb3   :  { %v148_v59 = vpop.f32.mrf.mxu0 }
  0xb4   :  { %290 = vmatmul.bf16.vlgmr.msra.gmra.mxu1 %v213_v58 }
 0x131   :  { %v291_v61 = vpop.f32.mrf.mxu1 }
 0x132   :  { %v292_v62 = vadd.f32 %v409_v60, %v291_v61 }
 0x134   :  { %295 = vst [vmem:[#allocation10] sm:$0xff] %v292_v62 }
 0x135   :  { %306 = dma.vmem_to_hbm [thread:$0]  %s302_s3, 128, %s304_s22, [#allocation6]  }
 0x139   :  { %v293_v63 = vpop.f32.mrf.mxu1 }
 0x13a   :  { %510 = dma.done.wait [#allocation6], 128  }
 0x13b   :  { %511 = vsyncadd [#allocation6], 4294967168 }
 0x13c   :  { %311 = vsyncpa [#allocation5], 1 }
 0x13d   :  { %312 = vsyncpa [#allocation8], 1 }
 0x13e   :  { %313 = vsyncpa [#allocation6], 1 }

// kernel: tpu_custom_call.1
= control target key start
LH: loop header
LB: loop body
LE: loop exit
PB: predicated region body
PF: predicated region fallthrough
CT: control target
= control target key end

     0   :  { %12 = vsyncpa [#allocation5], 0  ;;  %s582_s0 = inlined_call_operand.<no memory space> [shape: s32[1], index: 0, kind: input, shape index: {}]   ;;  %s583_s1 = inlined_call_operand.hbm [shape: bf16[8,128], index: 1, kind: input, shape index: {}]   ;;  %s584_s2 = inlined_call_operand.hbm [shape: bf16[128,128], index: 2, kind: input, shape index: {}]   ;;  %s585_s3 = inlined_call_operand.vmem [shape: f32[1,128], index: 3, kind: input, shape index: {}]   ;;  %s586_s4 = inlined_call_operand.hbm [shape: bf16[128,128], index: 4, kind: input, shape index: {}]   ;;  %s587_s5 = inlined_call_operand.vmem [shape: f32[1,128], index: 5, kind: input, shape index: {}]   ;;  %s588_s6 = inlined_call_operand.hbm [shape: f32[8,128], index: 6, kind: output, shape index: {}]  }
   0x1   :  { %13 = vsyncpa [#allocation8], 0  ;;  %s30_s23 = sshll.u32 %s584_s2, 4  ;;  %s31_s23 = int_to_ptr.hbm [resolvable:$true] %s30_s23 }
   0x2   :  { %14 = vsyncpa [#allocation6], 0  ;;  %s512_s24 = smov [#allocation7]   ;;  %s20_s28 = sshll.u32 %s583_s1, 4  ;;  %s21_s28 = int_to_ptr.hbm [resolvable:$true] %s20_s28 }
   0x3   :  { %s32_s25 = sshll.u32 %s512_s24, 4  ;;  %s513_s29 = smov 64   ;;  %s33_s25 = int_to_ptr.vmem [resolvable:$true] %s32_s25 }
   0x4   :  { %s514_s30 = smov 4   ;;  %s515_s7 = smov [#allocation4]  }
   0x5   :  { %38 = dma.hbm_to_vmem [thread:$0]  %s31_s23, 1024, %s33_s25, [#allocation8], %s513_s29, %s513_s29, %s514_s30  }
   0x6   :  { %s22_s8 = sshll.u32 %s515_s7, 4  ;;  %s45_s2 = sshll.u32 %s586_s4, 4  ;;  %s23_s8 = int_to_ptr.vmem [resolvable:$true] %s22_s8  ;;  %s46_s2 = int_to_ptr.hbm [resolvable:$true] %s45_s2 }
   0x7   :  { %25 = dma.hbm_to_vmem [thread:$0]  %s21_s28, 64, %s23_s8, [#allocation5]  }
   0x8   :  { %s516_s11 = smov [#allocation9]  }
   0x9   :  { %s47_s12 = sshll.u32 %s516_s11, 4  ;;  %s48_s12 = int_to_ptr.vmem [resolvable:$true] %s47_s12 }
   0xa   :  { %53 = dma.hbm_to_vmem [thread:$0]  %s46_s2, 1024, %s48_s12, [#allocation8], %s513_s29, %s513_s29, %s514_s30  }
   0xb   :  { %506 = dma.done.wait [#allocation5], 64  }
   0xc   :  { %507 = vsyncadd [#allocation5], 4294967232 }
   0xd   :  { %508 = dma.done.wait [#allocation8], 2048  }
   0xe   :  { %509 = vsyncadd [#allocation8], 4294965248  ;;  %v151_v0 = vlaneseq  ;;  %s158_s14 = smul.u32 2246822507, %s582_s0  ;;  %v390_v6 = vld [vmem:[#allocation7 + $0x38] sm:$0xff]  ;;  %v389_v8 = vld [vmem:[#allocation7 + $0x30] sm:$0xff] }
   0xf   :  { %137 = vmatpush.bf16.msra.mxu0 %v390_v6  ;;  %v398_v10 = vld [vmem:[#allocation9 + $0x38] sm:$0xff]  ;;  %v397_v12 = vld [vmem:[#allocation9 + $0x30] sm:$0xff]  ;;  %v388_v13 = vld [vmem:[#allocation7 + $0x28] sm:$0xff]  ;;  %v517_v32 = vmov 0.0   ;;  %s518_s0 = smov 96   ;;  %s519_s4 = smov 32  }
  0x10   :  { %v152_v1 = vshrl.u32 %v151_v0, 7  ;;  %v154_v2 = vand.u32 127, %v151_v0  ;;  %v161_v4 = vstv %s158_s14  ;;  %282 = vmatpush.bf16.msra.mxu1 %v398_v10  ;;  %v396_v16 = vld [vmem:[#allocation9 + $0x28] sm:$0xff]  ;;  %v387_v17 = vld [vmem:[#allocation7 + $0x20] sm:$0xff]  ;;  %v386_v20 = vld [vmem:[#allocation7 + $0x18] sm:$0xff]  ;;  %vm206_vm4 = vcmask 261120  }
  0x11   :  { %v385_v23 = vld [vmem:[#allocation7 + $0x10] sm:$0xff]  ;;  %v384_v30 = vld [vmem:[#allocation7 + $0x8] sm:$0xff]  ;;  %v383_v35 = vld [vmem:[#allocation7] sm:$0xff]  ;;  %vm208_vm5 = vcmask 523264   ;;  %vm210_vm6 = vcmask 785408   ;;  %s520_s19 = smov [#allocation10]  }
  0x12   :  { %v159_v3 = vshll.u32 %v152_v1, 5  ;;  %v68_v37 = vld [vmem:[#allocation4] sm:$0xf]  ;;  %v395_v39 = vld [vmem:[#allocation9 + $0x20] sm:$0xff]  ;;  %v393_v41 = vld [vmem:[#allocation9 + $0x10] sm:$0xff]  ;;  %s303_s22 = sshll.u32 %s588_s6, 4  ;;  %s304_s22 = int_to_ptr.hbm [resolvable:$true] %s303_s22 }
  0x13   :  { %138 = vmatpush.bf16.msra.mxu0 %v389_v8  ;;  %v394_v40 = vld [vmem:[#allocation9 + $0x18] sm:$0xff]  ;;  %v392_v42 = vld [vmem:[#allocation9 + $0x8] sm:$0xff]  ;;  %v391_v43 = vld [vmem:[#allocation9] sm:$0xff] }
  0x14   :  { %v160_v5 = vadd.s32 %v159_v3, %v154_v2  ;;  %283 = vmatpush.bf16.msra.mxu1 %v397_v12  ;;  %v408_v48 = vld [vmem:[%s585_s3] ss:$0 sm:$0xff]  ;;  %s301_s3 = sshll.u32 %s520_s19, 4  ;;  %s302_s3 = int_to_ptr.vmem [resolvable:$true] %s301_s3 }
  0x15   :  { %v409_v60 = vld [vmem:[%s587_s5] ss:$0 sm:$0xff] }
  0x16   :  { %v162_v7 = vadd.s32 %v161_v4, %v160_v5 }
  0x17   :  { %139 = vmatpush.bf16.msra.mxu0 %v388_v13 }
  0x18   :  { %v163_v9 = vshrl.u32 %v162_v7, 16  ;;  %284 = vmatpush.bf16.msra.mxu1 %v396_v16 }
  0x1a   :  { %v164_v11 = vxor.u32 %v163_v9, %v162_v7 }
  0x1b   :  { %140 = vmatpush.bf16.msra.mxu0 %v387_v17 }
  0x1c   :  { %v165_v14 = vmul.u32 2146121005, %v164_v11  ;;  %285 = vmatpush.bf16.msra.mxu1 %v395_v39 }
  0x1e   :  { %v166_v15 = vshrl.u32 %v165_v14, 15 }
  0x1f   :  { %141 = vmatpush.bf16.msra.mxu0 %v386_v20 }
  0x20   :  { %v167_v18 = vxor.u32 %v166_v15, %v165_v14  ;;  %286 = vmatpush.bf16.msra.mxu1 %v394_v40 }
  0x22   :  { %v168_v19 = vmul.u32 2221713035, %v167_v18 }
  0x23   :  { %142 = vmatpush.bf16.msra.mxu0 %v385_v23 }
  0x24   :  { %v169_v21 = vshrl.u32 %v168_v19, 16  ;;  %287 = vmatpush.bf16.msra.mxu1 %v393_v41 }
  0x26   :  { %v170_v22 = vxor.u32 %v169_v21, %v168_v19 }
  0x27   :  { %143 = vmatpush.bf16.msra.mxu0 %v384_v30 }
  0x28   :  { %v176_v24 = vshrl.u32 %v170_v22, 8  ;;  %v182_v25 = vshrl.u32 %v170_v22, 16  ;;  %v349_v26 = vshrl.u32 %v170_v22, 24  ;;  %288 = vmatpush.bf16.msra.mxu1 %v392_v42  ;;  %v171_v44 = vand.u32 255, %v170_v22 }
  0x2a   :  { %v177_v27 = vand.u32 255, %v176_v24  ;;  %v183_v28 = vand.u32 255, %v182_v25  ;;  %v350_v29 = vxor.u32 2147483648, %v349_v26  ;;  %v346_v46 = vxor.u32 2147483648, %v171_v44 }
  0x2b   :  { %144 = vmatpush.bf16.msra.mxu0 %v383_v35 }
  0x2c   :  { %v347_v31 = vxor.u32 2147483648, %v177_v27  ;;  %vm192_vm0 = vcmp.lt.s32.totalorder %v350_v29, 2147483776  ;;  %v348_v34 = vxor.u32 2147483648, %v183_v28  ;;  %289 = vmatpush.bf16.msra.mxu1 %v391_v43  ;;  %vm174_vm3 = vcmp.lt.s32.totalorder %v346_v46, 2147483776 }
  0x2d   :  { %v193_v33 = vsel %vm192_vm0, 2.0, %v517_v32  ;;  %v175_v47 = vsel %vm174_vm3, 2.0, %v517_v32 }
  0x2e   :  { %vm180_vm1 = vcmp.lt.s32.totalorder %v347_v31, 2147483776  ;;  %203 = vrot.lane.b32.xlu1 %v193_v33, %s518_s0  ;;  %vm186_vm2 = vcmp.lt.s32.totalorder %v348_v34, 2147483776  ;;  %145 = vmatmul.bf16.vlgmr.msra.gmra.mxu0 %v68_v37 }
  0x2f   :  { %v181_v36 = vsel %vm180_vm1, 2.0, %v517_v32  ;;  %v187_v38 = vsel %vm186_vm2, 2.0, %v517_v32 }
  0x30   :  { %195 = vrot.lane.b32.xlu0 %v181_v36, %s519_s4 }
  0x38   :  { %199 = vrot.lane.b32.xlu0 %v187_v38, %s513_s29 }
  0xa0   :  { %v204_v53 = vpop.permute.xlu1 %203 }
  0xa2   :  { %v196_v45 = vpop.permute.xlu0 %195 }
  0xa3   :  { %v207_v49 = vsel %vm206_vm4, %v175_v47, %v196_v45 }
  0xaa   :  { %v200_v50 = vpop.permute.xlu0 %199 }
  0xab   :  { %v146_v51 = vpop.f32.mrf.mxu0  ;;  %v209_v52 = vsel %vm208_vm5, %v207_v49, %v200_v50 }
  0xac   :  { %v147_v54 = vadd.f32 %v408_v48, %v146_v51  ;;  %v211_v56 = vsel %vm210_vm6, %v209_v52, %v204_v53 }
  0xae   :  { %v150_v55 = vmax.f32 %v147_v54, 0.0 }
  0xb0   :  { %v212_v57 = vmul.f32 %v211_v56, %v150_v55 }
  0xb2   :  { %v213_v58 = vpack.c.bf16 %v212_v57, %v212_v57 }
  0xb3   :  { %v148_v59 = vpop.f32.mrf.mxu0 }
  0xb4   :  { %290 = vmatmul.bf16.vlgmr.msra.gmra.mxu1 %v213_v58 }
 0x131   :  { %v291_v61 = vpop.f32.mrf.mxu1 }
 0x132   :  { %v292_v62 = vadd.f32 %v409_v60, %v291_v61 }
 0x134   :  { %295 = vst [vmem:[#allocation10] sm:$0xff] %v292_v62 }
 0x135   :  { %306 = dma.vmem_to_hbm [thread:$0]  %s302_s3, 128, %s304_s22, [#allocation6]  }
 0x139   :  { %v293_v63 = vpop.f32.mrf.mxu1 }
 0x13a   :  { %510 = dma.done.wait [#allocation6], 128  }
 0x13b   :  { %511 = vsyncadd [#allocation6], 4294967168 }
 0x13c   :  { %311 = vsyncpa [#allocation5], 1 }
 0x13d   :  { %312 = vsyncpa [#allocation8], 1 }
 0x13e   :  { %313 = vsyncpa [#allocation6], 1 }

</bundles_post_ra>
